<compile_context>
chip_gen: v6e
topology: v6e:2x2x1
jax: 0.10.0
libtpu: 0.0.40
codegen_flags: <defaults>
</compile_context>

<pallas_src>
import functools

import jax
import jax.numpy as jnp
from jax.experimental import pallas as pl
from jax.experimental.pallas import tpu as pltpu


# ---------------------------------------------------------------------------
# Tiling / budget helpers
# ---------------------------------------------------------------------------
def _round_up(x, m):
    return ((x + m - 1) // m) * m


def _pick_batch_tile(B, batch_tile):
    if B <= 16:
        return B
    # Aim for >= 2 batch tiles so v7x's two TensorCores both get work on the
    # "parallel" axis; harmless on single-TC v5e/v6e (~0.35us/grid-step).
    tb = min(batch_tile, _round_up(pl.cdiv(B, 2), 8))
    return min(tb, B)


def _pick_divisor_tile(total, target, aligns=(256, 128)):
    """Largest divisor of `total` <= target aligned to 256 (v6e/v7x MXU) or,
    failing that, 128.  Falls back to `total` (full extent is always legal)."""
    if total <= target:
        return total
    for align in aligns:
        t = (min(target, total) // align) * align
        while t >= align:
            if total % t == 0:
                return t
            t -= align
    return total


def _pick_inner_chunk(tkh, tb, align=128):
    """Sub-chunk of the resident kH block so the f32 hidden intermediate stays
    ~<= 1 MiB (tb*chunk*4B).  Must divide tkh and be lane-aligned."""
    if tkh <= align:
        return tkh
    limit = min(tkh, max(align, (1 << 20) // (4 * max(tb, 1))))
    c = (limit // align) * align
    while c >= align:
        if tkh % c == 0:
            return c
        c -= align
    return tkh


def _pick_head_block(k, d_out):
    """Heads per grid step for the stack path: smallest head group whose output
    slab (kh*d_out lanes) is a multiple of 128 (lane-dense writeback) with a
    modest unroll (<=16); otherwise all heads (full-extent block, always legal).
    Direct per-head slice stores keep the live range per head bounded."""
    for kh in range(1, min(k, 16) + 1):
        if k % kh == 0 and (kh * d_out) % 128 == 0:
            return kh
    return k


def _vmem_limit_bytes():
    cap = 128 * 1024 * 1024
    try:
        info = pltpu.get_tpu_info()
        cap = int(getattr(info, "vmem_capacity_bytes", cap))
    except Exception:
        pass
    # ~50% of physical VMEM: 64 MiB on v5e/v6e (128 MiB), 32 MiB on v7x (64 MiB)
    return max(32 * 1024 * 1024, min(64 * 1024 * 1024, cap // 2))


def _fits_resident(d_in, kH, d_out, tb, w_itemsize, out_itemsize, inner_chunk,
                   vmem_limit):
    """Conservative VMEM estimate with the full kH weight block resident
    (double-buffered operands + f32 accumulator + hidden working set)."""
    need = (2 * d_in * kH * w_itemsize          # W1 packed
            + 2 * kH * d_out * w_itemsize       # W2 packed
            + 2 * kH * 4                        # b1 packed (f32)
            + 2 * tb * d_in * w_itemsize        # x tiles
            + 2 * tb * d_out * out_itemsize     # out tiles
            + tb * d_out * 4                    # acc scratch
            + 2 * tb * inner_chunk * 4)         # hidden working set
    return need <= int(0.6 * vmem_limit)


# ---------------------------------------------------------------------------
# Kernels
# ---------------------------------------------------------------------------
def _mlp_k_mean_kernel(x_ref, w1_ref, b1_ref, w2_ref, b2m_ref, o_ref, acc_ref,
                       *, inner_chunk, hid_dtype):
    """Fused mean-over-heads MLP_k.

    grid = (batch_tiles, kH_tiles).  The second axis tiles the fused k*H
    contraction (usually a single fully-resident tile) and accumulates into a
    resident f32 scratch; the hidden intermediate is bounded by a small static
    sub-chunk loop over the resident weight block."""
    ki = pl.program_id(1)

    @pl.when(ki == 0)
    def _():
        acc_ref[...] = jnp.zeros_like(acc_ref)

    x = x_ref[...]
    tkh = w1_ref.shape[1]
    for c in range(tkh // inner_chunk):   # few iterations; bounds hid size
        sl = slice(c * inner_chunk, (c + 1) * inner_chunk)
        hid = jnp.dot(x, w1_ref[:, sl], preferred_element_type=hid_dtype)
        hid = jnp.maximum(hid + b1_ref[:, sl].astype(hid_dtype), 0.0)
        acc_ref[...] += jnp.dot(hid.astype(w2_ref.dtype), w2_ref[sl, :],
                                preferred_element_type=jnp.float32)

    @pl.when(ki == pl.num_programs(1) - 1)
    def _():
        # 1/k is folded into packed W2; b2m = mean_h(b2) precomputed in wrapper.
        o_ref[...] = (acc_ref[...] + b2m_ref[...].astype(jnp.float32)
                      ).astype(o_ref.dtype)


def _mlp_k_stack_kernel(x_ref, w1_ref, b1_ref, w2_ref, b2_ref, o_ref,
                        *, heads_per_block, hidden, d_out, fuse_first):
    """Per-head predictions.  Each head's result is stored directly into its
    static lane slice of the lane-dense (tb, kh*D_out) output block."""
    x = x_ref[...]
    if fuse_first:
        # One big first-layer matmul; H % 128 == 0 so per-head hidden slices
        # below are lane-tile aligned (layout-free).
        hid_all = jnp.dot(x, w1_ref[...], preferred_element_type=jnp.float32)
        hid_all = jnp.maximum(hid_all + b1_ref[...].astype(jnp.float32), 0.0)
    for j in range(heads_per_block):      # unrolled; live range per head bounded
        if fuse_first:
            hid = hid_all[:, j * hidden:(j + 1) * hidden]
        else:
            hid = jnp.dot(x, w1_ref[j], preferred_element_type=jnp.float32)
            hid = jnp.maximum(hid + b1_ref[j:j + 1, :].astype(jnp.float32), 0.0)
        y = jnp.dot(hid.astype(w2_ref.dtype), w2_ref[j],
                    preferred_element_type=jnp.float32)
        y = y + b2_ref[j:j + 1, :].astype(jnp.float32)
        o_ref[:, j * d_out:(j + 1) * d_out] = y.astype(o_ref.dtype)


# ---------------------------------------------------------------------------
# Parameter packing (hoisted out of the per-call hot path)
# ---------------------------------------------------------------------------
def pack_mlp_k_params(w1, b1, w2, b2, *, mean_over_heads=True, param_dtype=None):
    """Pack per-head parameters ONCE.  w1: (k,D_in,H); b1: (k,H);
    w2: (k,H,D_out); b2: (k,D_out).  param_dtype=jnp.bfloat16 streams weights
    in bf16 (recommended on v5e); biases stay f32."""
    k, d_in, hidden = w1.shape
    d_out = w2.shape[-1]
    wdt = param_dtype if param_dtype is not None else w1.dtype
    if mean_over_heads:
        kH = k * hidden
        w1p = jnp.transpose(w1, (1, 0, 2)).reshape(d_in, kH).astype(wdt)
        b1p = b1.reshape(1, kH).astype(jnp.float32)
        # fold 1/k into W2 (exact for power-of-two k) and precompute mean(b2)
        w2p = (w2.astype(jnp.float32) * (1.0 / k)).reshape(kH, d_out).astype(wdt)
        b2m = jnp.mean(b2.astype(jnp.float32), axis=0, keepdims=True)
        return dict(mode="mean", k=k, d_in=d_in, hidden=hidden, d_out=d_out,
                    w1p=w1p, b1p=b1p, w2p=w2p, b2m=b2m)
    fuse_first = (hidden % 128 == 0)
    if fuse_first:
        w1x = jnp.transpose(w1, (1, 0, 2)).reshape(d_in, k * hidden).astype(wdt)
        b1x = b1.reshape(1, k * hidden).astype(jnp.float32)
    else:
        w1x = w1.astype(wdt)
        b1x = b1.astype(jnp.float32)
    return dict(mode="stack", k=k, d_in=d_in, hidden=hidden, d_out=d_out,
                fuse_first=fuse_first, w1=w1x, b1=b1x,
                w2=w2.astype(wdt), b2=b2.astype(jnp.float32))


# ---------------------------------------------------------------------------
# Forward wrappers
# ---------------------------------------------------------------------------
def _mean_forward(x, p, *, batch_tile, kh_tile_target, bf16_epilogue,
                  single_buffer_weights):
    w1p, b1p, w2p, b2m = p["w1p"], p["b1p"], p["w2p"], p["b2m"]
    B, d_in = x.shape
    kH, d_out = w2p.shape
    out_dtype = x.dtype
    if x.dtype != w1p.dtype:
        x = x.astype(w1p.dtype)

    tb = _pick_batch_tile(B, batch_tile)
    nb = pl.cdiv(B, tb)
    vmem_limit = _vmem_limit_bytes()
    w_isz = jnp.dtype(w1p.dtype).itemsize
    o_isz = jnp.dtype(out_dtype).itemsize

    # Prefer fully-resident weights (nk == 1: constant index_map => DMA'd once,
    # never re-streamed per batch tile); tile the kH axis only if they don't fit.
    chunk_full = _pick_inner_chunk(kH, tb)
    if _fits_resident(d_in, kH, d_out, tb, w_isz, o_isz, chunk_full, vmem_limit):
        tkh = kH
    else:
        tkh = _pick_divisor_tile(kH, kh_tile_target)
    nk = kH // tkh
    inner_chunk = _pick_inner_chunk(tkh, tb)

    hid_dtype = (jnp.bfloat16
                 if (bf16_epilogue and w1p.dtype == jnp.bfloat16)
                 else jnp.float32)

    # v7x option: weights whose block index never changes need no double buffer.
    weight_mode = pl.Buffered(1) if (single_buffer_weights and nk == 1) else None

    def wspec(shape, imap):
        if weight_mode is None:
            return pl.BlockSpec(shape, imap)
        return pl.BlockSpec(shape, imap, pipeline_mode=weight_mode)

    kernel = functools.partial(_mlp_k_mean_kernel,
                               inner_chunk=inner_chunk, hid_dtype=hid_dtype)
    return pl.pallas_call(
        kernel,
        out_shape=jax.ShapeDtypeStruct((B, d_out), out_dtype),
        grid_spec=pltpu.PrefetchScalarGridSpec(
            num_scalar_prefetch=0,
            grid=(nb, nk),
            in_specs=[
                pl.BlockSpec((tb, d_in), lambda bi, ki: (bi, 0)),    # x
                wspec((d_in, tkh), lambda bi, ki: (0, ki)),          # W1 packed
                wspec((1, tkh), lambda bi, ki: (0, ki)),             # b1 packed
                wspec((tkh, d_out), lambda bi, ki: (ki, 0)),         # W2 packed
                pl.BlockSpec((1, d_out), lambda bi, ki: (0, 0)),     # b2 mean
            ],
            out_specs=pl.BlockSpec((tb, d_out), lambda bi, ki: (bi, 0)),
            scratch_shapes=[pltpu.VMEM((tb, d_out), jnp.float32)],
        ),
        compiler_params=pltpu.CompilerParams(
            dimension_semantics=("parallel", "arbitrary"),
            vmem_limit_bytes=vmem_limit,
        ),
    )(x, w1p, b1p, w2p, b2m)


def _stack_forward(x, p, *, batch_tile):
    k, d_in, hidden, d_out = p["k"], p["d_in"], p["hidden"], p["d_out"]
    fuse_first = p["fuse_first"]
    B = x.shape[0]
    out_dtype = x.dtype
    wdt = p["w2"].dtype
    if x.dtype != wdt:
        x = x.astype(wdt)

    tb = _pick_batch_tile(B, batch_tile)
    nb = pl.cdiv(B, tb)
    kh = _pick_head_block(k, d_out)
    nh = k // kh
    vmem_limit = _vmem_limit_bytes()

    if fuse_first:
        w1_spec = pl.BlockSpec((d_in, kh * hidden), lambda bi, hb: (0, hb))
        b1_spec = pl.BlockSpec((1, kh * hidden), lambda bi, hb: (0, hb))
    else:
        w1_spec = pl.BlockSpec((kh, d_in, hidden), lambda bi, hb: (hb, 0, 0))
        b1_spec = pl.BlockSpec((kh, hidden), lambda bi, hb: (hb, 0))

    kernel = functools.partial(_mlp_k_stack_kernel, heads_per_block=kh,
                               hidden=hidden, d_out=d_out, fuse_first=fuse_first)
    out_flat = pl.pallas_call(
        kernel,
        out_shape=jax.ShapeDtypeStruct((B, k * d_out), out_dtype),
        grid_spec=pltpu.PrefetchScalarGridSpec(
            num_scalar_prefetch=0,
            grid=(nb, nh),
            in_specs=[
                pl.BlockSpec((tb, d_in), lambda bi, hb: (bi, 0)),         # x
                w1_spec,                                                  # W1
                b1_spec,                                                  # b1
                pl.BlockSpec((kh, hidden, d_out), lambda bi, hb: (hb, 0, 0)),
                pl.BlockSpec((kh, d_out), lambda bi, hb: (hb, 0)),        # b2
            ],
            out_specs=pl.BlockSpec((tb, kh * d_out), lambda bi, hb: (bi, hb)),
        ),
        compiler_params=pltpu.CompilerParams(
            dimension_semantics=("parallel", "parallel"),
            vmem_limit_bytes=vmem_limit,
        ),
    )(x, p["w1"], p["b1"], p["w2"], p["b2"])
    return out_flat.reshape(B, k, d_out)   # free reshape (row-major contiguous)


def mlp_k_forward_packed(x, packed, *, batch_tile=256, kh_tile_target=2048,
                         bf16_epilogue=False, single_buffer_weights=False):
    """MLP_k forward on pre-packed parameters.  x: (B, D_in).
    Returns (B, D_out) for mean mode, else (B, k, D_out)."""
    if packed["mode"] == "mean":
        return _mean_forward(x, packed, batch_tile=batch_tile,
                             kh_tile_target=kh_tile_target,
                             bf16_epilogue=bf16_epilogue,
                             single_buffer_weights=single_buffer_weights)
    return _stack_forward(x, packed, batch_tile=batch_tile)


def mlp_k_forward(x, w1, b1, w2, b2, *, mean_over_heads=True, param_dtype=None,
                  **kw):
    """Convenience wrapper (packs every call).  In a real training/inference
    loop, call pack_mlp_k_params() once and mlp_k_forward_packed() per step."""
    packed = pack_mlp_k_params(w1, b1, w2, b2, mean_over_heads=mean_over_heads,
                               param_dtype=param_dtype)
    return mlp_k_forward_packed(x, packed, **kw)


# ---------------------------------------------------------------------------
# Reference + init
# ---------------------------------------------------------------------------
def _init_params(key, k, d_in, hidden, d_out, dtype=jnp.float32):
    """Deterministic init mimicking torch.nn.Linear default U(-1/sqrt(fan_in), .)."""
    k1, k2, k3, k4 = jax.random.split(key, 4)
    lim1 = 1.0 / jnp.sqrt(d_in)
    lim2 = 1.0 / jnp.sqrt(hidden)
    w1 = jax.random.uniform(k1, (k, d_in, hidden), dtype, -lim1, lim1)
    b1 = jax.random.uniform(k2, (k, hidden), dtype, -lim1, lim1)
    w2 = jax.random.uniform(k3, (k, hidden, d_out), dtype, -lim2, lim2)
    b2 = jax.random.uniform(k4, (k, d_out), dtype, -lim2, lim2)
    return w1, b1, w2, b2


def _reference(x, w1, b1, w2, b2, mean_over_heads=True):
    # plain-JAX reference of MLP_k.forward
    hid = jnp.maximum(jnp.einsum("bd,kdh->bkh", x, w1) + b1[None, :, :], 0.0)
    preds = jnp.einsum("bkh,kho->bko", hid, w2) + b2[None, :, :]
    return preds.mean(axis=1) if mean_over_heads else preds


if __name__ == "__main__":
    key = jax.random.PRNGKey(0)
    kx, kp, kx2, kp2 = jax.random.split(key, 4)

    # ---- config 1: module defaults (k=32), small tabular shapes ----
    B, D_in, H, D_out, K = 8, 16, 32, 8, 32
    x = jax.random.normal(kx, (B, D_in), jnp.float32)
    w1, b1, w2, b2 = _init_params(kp, K, D_in, H, D_out)

    # mean_over_heads=True: pack once (hoisted), then call the packed forward.
    packed_mean = pack_mlp_k_params(w1, b1, w2, b2, mean_over_heads=True)
    out = jax.block_until_ready(mlp_k_forward_packed(x, packed_mean))
    ref = _reference(x, w1, b1, w2, b2, True)
    assert out.shape == (B, D_out)
    assert jnp.allclose(out, ref, atol=1e-4, rtol=1e-4)

    # mean_over_heads=False: per-head predictions, lane-dense output slab.
    packed_stack = pack_mlp_k_params(w1, b1, w2, b2, mean_over_heads=False)
    preds = jax.block_until_ready(mlp_k_forward_packed(x, packed_stack))
    ref_preds = _reference(x, w1, b1, w2, b2, False)
    assert preds.shape == (B, K, D_out)
    assert jnp.allclose(preds, ref_preds, atol=1e-4, rtol=1e-4)

    # Convenience wrapper (packs internally).
    out2 = jax.block_until_ready(mlp_k_forward(x, w1, b1, w2, b2))
    assert jnp.allclose(out2, ref, atol=1e-4, rtol=1e-4)

    # bf16 weight/activation streaming + bf16 hidden epilogue (v5e/v6e/v7x opt).
    packed_bf16 = pack_mlp_k_params(w1, b1, w2, b2, mean_over_heads=True,
                                    param_dtype=jnp.bfloat16)
    out_bf16 = jax.block_until_ready(
        mlp_k_forward_packed(x, packed_bf16, bf16_epilogue=True))
    assert out_bf16.shape == (B, D_out)
    assert jnp.allclose(out_bf16, ref, atol=5e-2, rtol=5e-2)

    # ---- config 2: H % 128 == 0 exercises the fused-first-layer stack path ----
    B2, D_in2, H2, D_out2, K2 = 16, 16, 128, 8, 16
    x2 = jax.random.normal(kx2, (B2, D_in2), jnp.float32)
    w1b, b1b, w2b, b2b = _init_params(kp2, K2, D_in2, H2, D_out2)
    packed_stack2 = pack_mlp_k_params(w1b, b1b, w2b, b2b, mean_over_heads=False)
    preds2 = jax.block_until_ready(mlp_k_forward_packed(x2, packed_stack2))
    ref2 = _reference(x2, w1b, b1b, w2b, b2b, False)
    assert preds2.shape == (B2, K2, D_out2)
    assert jnp.allclose(preds2, ref2, atol=1e-4, rtol=1e-4)

    print("KERNEL_OK")
</pallas_src>

<mosaic_0001>
module attributes {stable_mosaic.version = 11 : i64} {
  func.func @_mlp_k_mean_kernel(%arg0: i32, %arg1: i32, %arg2: memref<8x16xf32, #tpu.memory_space<vmem>>, %arg3: memref<16x1024xf32, #tpu.memory_space<vmem>>, %arg4: memref<1x1024xf32, #tpu.memory_space<vmem>>, %arg5: memref<1024x8xf32, #tpu.memory_space<vmem>>, %arg6: memref<1x8xf32, #tpu.memory_space<vmem>>, %arg7: memref<8x8xf32, #tpu.memory_space<vmem>>, %arg8: memref<8x8xf32, #tpu.memory_space<vmem>>) attributes {dimension_semantics = [#tpu.dimension_semantics<parallel>, #tpu.dimension_semantics<arbitrary>], iteration_bounds = array<i64: 1, 1>, scalar_prefetch = 0 : i64, scratch_operands = 1 : i64, tpu.core_type = #tpu.core_type<tc>, window_params = [{transform_indices = @transform_0, window_bounds = array<i64: 8, 16>}, {transform_indices = @transform_1, window_bounds = array<i64: 16, 1024>}, {transform_indices = @transform_2, window_bounds = array<i64: 1, 1024>}, {transform_indices = @transform_3, window_bounds = array<i64: 1024, 8>}, {pipeline_mode = #tpu.pipeline_mode<synchronous>, transform_indices = @transform_4, window_bounds = array<i64: 1, 8>}, {transform_indices = @transform_5, window_bounds = array<i64: 8, 8>}]} {
    %c0_i32 = arith.constant 0 : i32
    %0 = arith.cmpi eq, %arg1, %c0_i32 : i32
    %1 = arith.extui %0 : i1 to i32
    %c0_i32_0 = arith.constant 0 : i32
    %2 = arith.cmpi ne, %1, %c0_i32_0 : i32
    scf.if %2 {
      %cst_16 = arith.constant 0.000000e+00 : f32
      %19 = vector.broadcast %cst_16 : f32 to vector<8x8xf32>
      %c0_17 = arith.constant 0 : index
      %c0_18 = arith.constant 0 : index
      %20 = vector.load %arg8[%c0_17, %c0_18] : memref<8x8xf32, #tpu.memory_space<vmem>>, vector<8x8xf32>
      tpu.vector_store %arg8[%c0_17, %c0_18], %19 {strides = array<i32>} : memref<8x8xf32, #tpu.memory_space<vmem>>, vector<8x8xf32>,
    } else {
    }
    %c0 = arith.constant 0 : index
    %c0_1 = arith.constant 0 : index
    %3 = vector.load %arg2[%c0, %c0_1] : memref<8x16xf32, #tpu.memory_space<vmem>>, vector<8x16xf32>
    %c0_2 = arith.constant 0 : index
    %c0_3 = arith.constant 0 : index
    %4 = vector.load %arg3[%c0_2, %c0_3] : memref<16x1024xf32, #tpu.memory_space<vmem>>, vector<16x1024xf32>
    %cst = arith.constant dense<0.000000e+00> : vector<8x1024xf32>
    %5 = tpu.matmul %3, %4, %cst {dimension_numbers = #tpu.dot_dimension_numbers<[1], [0], [0], [1], [0, 0, 1, 1], [], []>} : vector<8x16xf32>, vector<16x1024xf32>, vector<8x1024xf32> -> vector<8x1024xf32>
    %c0_4 = arith.constant 0 : index
    %c0_5 = arith.constant 0 : index
    %6 = vector.load %arg4[%c0_4, %c0_5] : memref<1x1024xf32, #tpu.memory_space<vmem>>, vector<1x1024xf32>
    %7 = vector.broadcast %6 : vector<1x1024xf32> to vector<8x1024xf32>
    %8 = arith.addf %5, %7 : vector<8x1024xf32>
    %cst_6 = arith.constant 0.000000e+00 : f32
    %9 = vector.broadcast %cst_6 : f32 to vector<8x1024xf32>
    %10 = arith.maximumf %8, %9 : vector<8x1024xf32>
    %c0_7 = arith.constant 0 : index
    %c0_8 = arith.constant 0 : index
    %11 = vector.load %arg8[%c0_7, %c0_8] : memref<8x8xf32, #tpu.memory_space<vmem>>, vector<8x8xf32>
    %c0_9 = arith.constant 0 : index
    %c0_10 = arith.constant 0 : index
    %12 = vector.load %arg5[%c0_9, %c0_10] : memref<1024x8xf32, #tpu.memory_space<vmem>>, vector<1024x8xf32>
    %cst_11 = arith.constant dense<0.000000e+00> : vector<8x8xf32>
    %13 = tpu.matmul %10, %12, %cst_11 {dimension_numbers = #tpu.dot_dimension_numbers<[1], [0], [0], [1], [0, 0, 1, 1], [], []>} : vector<8x1024xf32>, vector<1024x8xf32>, vector<8x8xf32> -> vector<8x8xf32>
    %14 = arith.addf %11, %13 : vector<8x8xf32>
    %c0_12 = arith.constant 0 : index
    %c0_13 = arith.constant 0 : index
    %15 = vector.load %arg8[%c0_12, %c0_13] : memref<8x8xf32, #tpu.memory_space<vmem>>, vector<8x8xf32>
    tpu.vector_store %arg8[%c0_12, %c0_13], %14 {strides = array<i32>} : memref<8x8xf32, #tpu.memory_space<vmem>>, vector<8x8xf32>,
    %c0_i32_14 = arith.constant 0 : i32
    %16 = arith.cmpi eq, %arg1, %c0_i32_14 : i32
    %17 = arith.extui %16 : i1 to i32
    %c0_i32_15 = arith.constant 0 : i32
    %18 = arith.cmpi ne, %17, %c0_i32_15 : i32
    scf.if %18 {
      %c0_16 = arith.constant 0 : index
      %c0_17 = arith.constant 0 : index
      %19 = vector.load %arg8[%c0_16, %c0_17] : memref<8x8xf32, #tpu.memory_space<vmem>>, vector<8x8xf32>
      %c0_18 = arith.constant 0 : index
      %c0_19 = arith.constant 0 : index
      %20 = vector.load %arg6[%c0_18, %c0_19] : memref<1x8xf32, #tpu.memory_space<vmem>>, vector<1x8xf32>
      %21 = vector.broadcast %20 : vector<1x8xf32> to vector<8x8xf32>
      %22 = arith.addf %19, %21 : vector<8x8xf32>
      %c0_20 = arith.constant 0 : index
      %c0_21 = arith.constant 0 : index
      %23 = vector.load %arg7[%c0_20, %c0_21] : memref<8x8xf32, #tpu.memory_space<vmem>>, vector<8x8xf32>
      tpu.vector_store %arg7[%c0_20, %c0_21], %22 {strides = array<i32>} : memref<8x8xf32, #tpu.memory_space<vmem>>, vector<8x8xf32>,
    } else {
    }
    return
  }
  func.func @transform_0(%arg0: i32, %arg1: i32) -> (i32, i32) {
    %c0_i32 = arith.constant 0 : i32
    %c0_i32_0 = arith.constant 0 : i32
    return %arg0, %c0_i32 : i32, i32
  }
  func.func @transform_1(%arg0: i32, %arg1: i32) -> (i32, i32) {
    %c0_i32 = arith.constant 0 : i32
    %c0_i32_0 = arith.constant 0 : i32
    return %c0_i32, %arg1 : i32, i32
  }
  func.func @transform_2(%arg0: i32, %arg1: i32) -> (i32, i32) {
    %c0_i32 = arith.constant 0 : i32
    %c0_i32_0 = arith.constant 0 : i32
    return %c0_i32, %arg1 : i32, i32
  }
  func.func @transform_3(%arg0: i32, %arg1: i32) -> (i32, i32) {
    %c0_i32 = arith.constant 0 : i32
    %c0_i32_0 = arith.constant 0 : i32
    return %arg1, %c0_i32 : i32, i32
  }
  func.func @transform_4(%arg0: i32, %arg1: i32) -> (i32, i32) {
    %c0_i32 = arith.constant 0 : i32
    %c0_i32_0 = arith.constant 0 : i32
    %c0_i32_1 = arith.constant 0 : i32
    return %c0_i32, %c0_i32_0 : i32, i32
  }
  func.func @transform_5(%arg0: i32, %arg1: i32) -> (i32, i32) {
    %c0_i32 = arith.constant 0 : i32
    %c0_i32_0 = arith.constant 0 : i32
    return %arg0, %c0_i32 : i32, i32
  }
}

</mosaic_0001>

<bundles_post_ra>
// kernel: tpu_custom_call.1
= control target key start
LH: loop header
LB: loop body
LE: loop exit
PB: predicated region body
PF: predicated region fallthrough
CT: control target
= control target key end

     0   :  { %vm86_vm0 = vcmask 130048   ;;  %v990_v9 = vmov 0.0   ;;  %s1498_s0 = inlined_call_operand.vmem [shape: f32[8,16], index: 0, kind: input, shape index: {}]   ;;  %s1499_s1 = inlined_call_operand.vmem [shape: f32[16,1024], index: 1, kind: input, shape index: {}]   ;;  %s1500_s2 = inlined_call_operand.vmem [shape: f32[1,1024], index: 2, kind: input, shape index: {}]   ;;  %s1501_s3 = inlined_call_operand.vmem [shape: f32[1024,8], index: 3, kind: input, shape index: {}]   ;;  %s1502_s4 = inlined_call_operand.vmem [shape: f32[1,8], index: 4, kind: input, shape index: {}]   ;;  %s1503_s5 = inlined_call_operand.hbm [shape: f32[8,8], index: 5, kind: output, shape index: {}]  }
   0x1   :  { %v37_v0 = vld [vmem:[%s1499_s1 + $0x48] sm:$0xff]  ;;  %v39_v1 = vld [vmem:[%s1499_s1 + $0x58] sm:$0xff]  ;;  %v36_v2 = vld [vmem:[%s1499_s1 + $0x40] sm:$0xff]  ;;  %154 = vmatprep.mubr.f32.mxu0 %v990_v9  ;;  %225 = vmatprep.mubr.f32.mxu1 %v990_v9 }
   0x2   :  { %118 = vmatprep.subr.mxu0 %v37_v0  ;;  %189 = vmatprep.subr.mxu1 %v39_v1  ;;  %v38_v3 = vld [vmem:[%s1499_s1 + $0x50] sm:$0xff]  ;;  %v29_v4 = vld [vmem:[%s1499_s1 + $0x8] sm:$0xff]  ;;  %v31_v5 = vld [vmem:[%s1499_s1 + $0x18] sm:$0xff] }
   0x3   :  { %119 = vmatpush1.msra.mxu0 %v36_v2  ;;  %190 = vmatpush1.msra.mxu1 %v38_v3  ;;  %v28_v6 = vld [vmem:[%s1499_s1] sm:$0xff]  ;;  %v30_v7 = vld [vmem:[%s1499_s1 + $0x10] sm:$0xff]  ;;  %v41_v10 = vld [vmem:[%s1499_s1 + $0x68] sm:$0xff] }
   0x4   :  { %120 = vmatprep.subr.mxu0 %v29_v4  ;;  %191 = vmatprep.subr.mxu1 %v31_v5  ;;  %v27_v8 = vld [vmem:[%s1498_s0] sm:$0xff]  ;;  %v43_v11 = vld [vmem:[%s1499_s1 + $0x78] sm:$0xff]  ;;  %v33_v13 = vld [vmem:[%s1499_s1 + $0x28] sm:$0xff] }
   0x5   :  { %121 = vmatpush1.msra.mxu0 %v28_v6  ;;  %192 = vmatpush1.msra.mxu1 %v30_v7  ;;  %v40_v12 = vld [vmem:[%s1499_s1 + $0x60] sm:$0xff]  ;;  %v42_v14 = vld [vmem:[%s1499_s1 + $0x70] sm:$0xff]  ;;  %v35_v16 = vld [vmem:[%s1499_s1 + $0x38] sm:$0xff] }
   0x6   :  { %821 = vmatmul.mubr.msk.f32.vlgmr.msra.gmra.mxu0 %vm86_vm0, %v27_v8  ;;  %822 = vmatmul.mubr.msk.f32.vlgmr.msra.gmra.mxu1 %vm86_vm0, %v27_v8  ;;  %v32_v15 = vld [vmem:[%s1499_s1 + $0x20] sm:$0xff]  ;;  %v34_v17 = vld [vmem:[%s1499_s1 + $0x30] sm:$0xff]  ;;  %v414_v18 = vld [vmem:[%s1501_s3 + $0xf8] sm:$0xff] }
   0x7   :  { %260 = vmatprep.subr.mxu0 %v41_v10  ;;  %331 = vmatprep.subr.mxu1 %v43_v11  ;;  %v446_v19 = vld [vmem:[%s1501_s3 + $0x1f8] sm:$0xff]  ;;  %v413_v22 = vld [vmem:[%s1501_s3 + $0xf0] sm:$0xff]  ;;  %v412_v26 = vld [vmem:[%s1501_s3 + $0xe8] sm:$0xff] }
   0x8   :  { %261 = vmatpush1.msra.mxu0 %v40_v12  ;;  %296 = vmatprep.mubr.f32.mxu0 %v990_v9  ;;  %v398_v20 = vld [vmem:[%s1501_s3 + $0x78] sm:$0xff]  ;;  %v445_v23 = vld [vmem:[%s1501_s3 + $0x1f0] sm:$0xff]  ;;  %v444_v27 = vld [vmem:[%s1501_s3 + $0x1e8] sm:$0xff] }
   0x9   :  { %262 = vmatprep.subr.mxu0 %v33_v13  ;;  %332 = vmatpush1.msra.mxu1 %v42_v14  ;;  %v430_v21 = vld [vmem:[%s1501_s3 + $0x178] sm:$0xff]  ;;  %v397_v24 = vld [vmem:[%s1501_s3 + $0x70] sm:$0xff]  ;;  %v396_v28 = vld [vmem:[%s1501_s3 + $0x68] sm:$0xff] }
   0xa   :  { %263 = vmatpush1.msra.mxu0 %v32_v15  ;;  %333 = vmatprep.subr.mxu1 %v35_v16  ;;  %v429_v25 = vld [vmem:[%s1501_s3 + $0x170] sm:$0xff]  ;;  %v428_v29 = vld [vmem:[%s1501_s3 + $0x168] sm:$0xff]  ;;  %v411_v30 = vld [vmem:[%s1501_s3 + $0xe0] sm:$0xff] }
   0xb   :  { %823 = vmatmul.mubr.msk.f32.vlgmr.msra.gmra.mxu0 %vm86_vm0, %v27_v8  ;;  %334 = vmatpush1.msra.mxu1 %v34_v17  ;;  %v443_v31 = vld [vmem:[%s1501_s3 + $0x1e0] sm:$0xff]  ;;  %v410_v34 = vld [vmem:[%s1501_s3 + $0xd8] sm:$0xff]  ;;  %v409_v38 = vld [vmem:[%s1501_s3 + $0xd0] sm:$0xff] }
   0xc   :  { %367 = vmatprep.mubr.f32.mxu1 %v990_v9  ;;  %826 = vmatprep.subr.mxu0 %v414_v18  ;;  %v395_v32 = vld [vmem:[%s1501_s3 + $0x60] sm:$0xff]  ;;  %v442_v35 = vld [vmem:[%s1501_s3 + $0x1d8] sm:$0xff]  ;;  %v441_v39 = vld [vmem:[%s1501_s3 + $0x1d0] sm:$0xff] }
   0xd   :  { %824 = vmatmul.mubr.msk.f32.vlgmr.msra.gmra.mxu1 %vm86_vm0, %v27_v8  ;;  %861 = vmatprep.subr.mxu1 %v446_v19  ;;  %v427_v33 = vld [vmem:[%s1501_s3 + $0x160] sm:$0xff]  ;;  %v394_v36 = vld [vmem:[%s1501_s3 + $0x58] sm:$0xff]  ;;  %v393_v40 = vld [vmem:[%s1501_s3 + $0x50] sm:$0xff] }
   0xe   :  { %827 = vmatpush3.msra.mxu0 %v398_v20  ;;  %862 = vmatpush3.msra.mxu1 %v430_v21  ;;  %v426_v37 = vld [vmem:[%s1501_s3 + $0x158] sm:$0xff]  ;;  %v425_v41 = vld [vmem:[%s1501_s3 + $0x150] sm:$0xff]  ;;  %v408_v42 = vld [vmem:[%s1501_s3 + $0xc8] sm:$0xff] }
   0xf   :  { %828 = vmatprep.subr.mxu0 %v413_v22  ;;  %863 = vmatprep.subr.mxu1 %v445_v23  ;;  %v440_v43 = vld [vmem:[%s1501_s3 + $0x1c8] sm:$0xff] }
  0x10   :  { %829 = vmatpush3.msra.mxu0 %v397_v24  ;;  %864 = vmatpush3.msra.mxu1 %v429_v25 }
  0x11   :  { %830 = vmatprep.subr.mxu0 %v412_v26  ;;  %865 = vmatprep.subr.mxu1 %v444_v27 }
  0x12   :  { %831 = vmatpush3.msra.mxu0 %v396_v28  ;;  %866 = vmatpush3.msra.mxu1 %v428_v29 }
  0x13   :  { %832 = vmatprep.subr.mxu0 %v411_v30  ;;  %867 = vmatprep.subr.mxu1 %v443_v31 }
  0x14   :  { %833 = vmatpush3.msra.mxu0 %v395_v32  ;;  %868 = vmatpush3.msra.mxu1 %v427_v33 }
  0x15   :  { %834 = vmatprep.subr.mxu0 %v410_v34  ;;  %869 = vmatprep.subr.mxu1 %v442_v35 }
  0x16   :  { %835 = vmatpush3.msra.mxu0 %v394_v36  ;;  %870 = vmatpush3.msra.mxu1 %v426_v37 }
  0x17   :  { %10 = vsyncpa [#allocation4], 0  ;;  %836 = vmatprep.subr.mxu0 %v409_v38  ;;  %871 = vmatprep.subr.mxu1 %v441_v39  ;;  %v392_v44 = vld [vmem:[%s1501_s3 + $0x48] sm:$0xff]  ;;  %v407_v46 = vld [vmem:[%s1501_s3 + $0xc0] sm:$0xff]  ;;  %v46_v21 = vlaneseq  ;;  %vm25_vm1 = vcmask 64512   ;;  %s991_s11 = smov [#allocation3]  }
  0x18   :  { %v424_v45 = vld [vmem:[%s1501_s3 + $0x148] sm:$0xff]  ;;  %837 = vmatpush3.msra.mxu0 %v393_v40  ;;  %872 = vmatpush3.msra.mxu1 %v425_v41  ;;  %v439_v47 = vld [vmem:[%s1501_s3 + $0x1c0] sm:$0xff]  ;;  %v406_v50 = vld [vmem:[%s1501_s3 + $0xb8] sm:$0xff]  ;;  %26 = vst.msk [vmem:[#allocation2] sm:$0xff] %vm25_vm1, %v990_v9  ;;  %s813_s12 = sshll.u32 %s991_s11, 4  ;;  %s814_s12 = int_to_ptr.vmem [resolvable:$true] %s813_s12 }
  0x19   :  { %838 = vmatprep.subr.mxu0 %v408_v42  ;;  %873 = vmatprep.subr.mxu1 %v440_v43  ;;  %v391_v48 = vld [vmem:[%s1501_s3 + $0x40] sm:$0xff]  ;;  %v438_v51 = vld [vmem:[%s1501_s3 + $0x1b8] sm:$0xff]  ;;  %v405_v54 = vld [vmem:[%s1501_s3 + $0xb0] sm:$0xff]  ;;  %v1279_v22 = vshrl.u32 %v46_v21, 7  ;;  %s968_s13 = scalar_lea.vmem %s814_s12, 128  ;;  %p973_p1 = scmp.lt.s32.totalorder %s814_s12, %s814_s12 }
  0x1a   :  { %v423_v49 = vld [vmem:[%s1501_s3 + $0x140] sm:$0xff]  ;;  %839 = vmatpush3.msra.mxu0 %v392_v44  ;;  %874 = vmatpush3.msra.mxu1 %v424_v45  ;;  %v390_v52 = vld [vmem:[%s1501_s3 + $0x38] sm:$0xff]  ;;  %v437_v55 = vld [vmem:[%s1501_s3 + $0x1b0] sm:$0xff]  ;;  %p969_p0 = scmp.ne.s32.totalorder %s814_s12, %s968_s13  ;;  %p974_p2 = scmp.lt.s32.totalorder %s968_s13, %s968_s13 }
  0x1b   :  { %840 = vmatprep.subr.mxu0 %v407_v46  ;;  %875 = vmatprep.subr.mxu1 %v439_v47  ;;  %v422_v53 = vld [vmem:[%s1501_s3 + $0x138] sm:$0xff]  ;;  %v389_v56 = vld [vmem:[%s1501_s3 + $0x30] sm:$0xff]  ;;  %v404_v58 = vld [vmem:[%s1501_s3 + $0xa8] sm:$0xff]  ;;  %v56_v23 = vsub.s32 2, %v1279_v22  ;;  %v48_v24 = vsub.s32 0, %v1279_v22  ;;  %v52_v26 = vsub.s32 1, %v1279_v22 }
  0x1c   :  { %841 = vmatpush3.msra.mxu0 %v391_v48  ;;  %876 = vmatpush3.msra.mxu1 %v423_v49  ;;  %v421_v57 = vld [vmem:[%s1501_s3 + $0x130] sm:$0xff]  ;;  %v436_v59 = vld [vmem:[%s1501_s3 + $0x1a8] sm:$0xff]  ;;  %v403_v62 = vld [vmem:[%s1501_s3 + $0xa0] sm:$0xff]  ;;  %v60_v27 = vsub.s32 3, %v1279_v22  ;;  %v76_v21 = vsub.s32 7, %v1279_v22  ;;  %p975_p3 = por %p974_p2, %p973_p1 }
  0x1d   :  { %842 = vmatprep.subr.mxu0 %v406_v50  ;;  %877 = vmatprep.subr.mxu1 %v438_v51  ;;  %v388_v60 = vld [vmem:[%s1501_s3 + $0x28] sm:$0xff]  ;;  %v435_v63 = vld [vmem:[%s1501_s3 + $0x1a0] sm:$0xff]  ;;  %v402_v2 = vld [vmem:[%s1501_s3 + $0x98] sm:$0xff] }
  0x1e   :  { %843 = vmatpush3.msra.mxu0 %v390_v52  ;;  %878 = vmatpush3.msra.mxu1 %v422_v53  ;;  %v420_v61 = vld [vmem:[%s1501_s3 + $0x128] sm:$0xff]  ;;  %v387_v0 = vld [vmem:[%s1501_s3 + $0x20] sm:$0xff]  ;;  %v434_v3 = vld [vmem:[%s1501_s3 + $0x198] sm:$0xff]  ;;  %p976_p4 = pnand %p975_p3, %p969_p0 }
  0x1f   :  { %844 = vmatprep.subr.mxu0 %v405_v54  ;;  %879 = vmatprep.subr.mxu1 %v437_v55  ;;  %v419_v1 = vld [vmem:[%s1501_s3 + $0x120] sm:$0xff]  ;;  %v386_v4 = vld [vmem:[%s1501_s3 + $0x18] sm:$0xff]  ;;  %v401_v6 = vld [vmem:[%s1501_s3 + $0x90] sm:$0xff] }
  0x20   :  { %845 = vmatpush3.msra.mxu0 %v389_v56  ;;  %880 = vmatpush3.msra.mxu1 %v421_v57  ;;  %v418_v5 = vld [vmem:[%s1501_s3 + $0x118] sm:$0xff]  ;;  %v433_v7 = vld [vmem:[%s1501_s3 + $0x190] sm:$0xff]  ;;  %v400_v11 = vld [vmem:[%s1501_s3 + $0x88] sm:$0xff] }
  0x21   :  { %846 = vmatprep.subr.mxu0 %v404_v58  ;;  %881 = vmatprep.subr.mxu1 %v436_v59  ;;  %v385_v8 = vld [vmem:[%s1501_s3 + $0x10] sm:$0xff]  ;;  %v432_v12 = vld [vmem:[%s1501_s3 + $0x188] sm:$0xff]  ;;  %v399_v15 = vld [vmem:[%s1501_s3 + $0x80] sm:$0xff] }
  0x22   :  { %847 = vmatpush3.msra.mxu0 %v388_v60  ;;  %882 = vmatpush3.msra.mxu1 %v420_v61  ;;  %v417_v10 = vld [vmem:[%s1501_s3 + $0x110] sm:$0xff]  ;;  %v384_v13 = vld [vmem:[%s1501_s3 + $0x8] sm:$0xff]  ;;  %v431_v16 = vld [vmem:[%s1501_s3 + $0x180] sm:$0xff] }
  0x23   :  { %848 = vmatprep.subr.mxu0 %v403_v62  ;;  %883 = vmatprep.subr.mxu1 %v435_v63  ;;  %v416_v14 = vld [vmem:[%s1501_s3 + $0x108] sm:$0xff]  ;;  %v383_v17 = vld [vmem:[%s1501_s3] sm:$0xff]  ;;  %v478_v19 = vld [vmem:[%s1501_s3 + $0x2f8] sm:$0xff] }
  0x24   :  { %849 = vmatpush3.msra.mxu0 %v387_v0  ;;  %884 = vmatpush3.msra.mxu1 %v419_v1  ;;  %v415_v18 = vld [vmem:[%s1501_s3 + $0x100] sm:$0xff]  ;;  %v510_v20 = vld [vmem:[%s1501_s3 + $0x3f8] sm:$0xff]  ;;  %v477_v46 = vld [vmem:[%s1501_s3 + $0x2f0] sm:$0xff] }
  0x25   :  { %850 = vmatprep.subr.mxu0 %v402_v2  ;;  %885 = vmatprep.subr.mxu1 %v434_v3  ;;  %v1286_v25 = vld [vmem:[%s1500_s2] sm:$0xff]  ;;  %v462_v44 = vld [vmem:[%s1501_s3 + $0x278] sm:$0xff]  ;;  %v509_v47 = vld [vmem:[%s1501_s3 + $0x3f0] sm:$0xff] }
  0x26   :  { %851 = vmatpush3.msra.mxu0 %v386_v4  ;;  %886 = vmatpush3.msra.mxu1 %v418_v5  ;;  %v57_v28 = vrot.slane %v1286_v25, %v56_v23  ;;  %v49_v29 = vrot.slane %v1286_v25, %v48_v24  ;;  %v53_v30 = vrot.slane %v1286_v25, %v52_v26  ;;  %v494_v45 = vld [vmem:[%s1501_s3 + $0x378] sm:$0xff]  ;;  %v461_v48 = vld [vmem:[%s1501_s3 + $0x270] sm:$0xff]  ;;  %v476_v50 = vld [vmem:[%s1501_s3 + $0x2e8] sm:$0xff] }
  0x27   :  { %852 = vmatprep.subr.mxu0 %v401_v6  ;;  %887 = vmatprep.subr.mxu1 %v433_v7  ;;  %v61_v31 = vrot.slane %v1286_v25, %v60_v27  ;;  %v493_v49 = vld [vmem:[%s1501_s3 + $0x370] sm:$0xff]  ;;  %v508_v51 = vld [vmem:[%s1501_s3 + $0x3e8] sm:$0xff]  ;;  %v475_v54 = vld [vmem:[%s1501_s3 + $0x2e0] sm:$0xff]  ;;  %v72_v27 = vsub.s32 6, %v1279_v22 }
  0x28   :  { %853 = vmatpush3.msra.mxu0 %v385_v8  ;;  %888 = vmatpush3.msra.mxu1 %v417_v10  ;;  %v460_v52 = vld [vmem:[%s1501_s3 + $0x268] sm:$0xff]  ;;  %v507_v55 = vld [vmem:[%s1501_s3 + $0x3e0] sm:$0xff]  ;;  %v474_v58 = vld [vmem:[%s1501_s3 + $0x2d8] sm:$0xff] }
  0x29   :  { %854 = vmatprep.subr.mxu0 %v400_v11  ;;  %889 = vmatprep.subr.mxu1 %v432_v12  ;;  %v492_v53 = vld [vmem:[%s1501_s3 + $0x368] sm:$0xff]  ;;  %v459_v56 = vld [vmem:[%s1501_s3 + $0x260] sm:$0xff]  ;;  %v506_v59 = vld [vmem:[%s1501_s3 + $0x3d8] sm:$0xff] }
  0x2a   :  { %855 = vmatpush3.msra.mxu0 %v384_v13  ;;  %890 = vmatpush3.msra.mxu1 %v416_v14  ;;  %v491_v57 = vld [vmem:[%s1501_s3 + $0x360] sm:$0xff]  ;;  %v458_v60 = vld [vmem:[%s1501_s3 + $0x258] sm:$0xff]  ;;  %v473_v62 = vld [vmem:[%s1501_s3 + $0x2d0] sm:$0xff]  ;;  %v68_v13 = vsub.s32 5, %v1279_v22 }
  0x2b   :  { %856 = vmatprep.subr.mxu0 %v399_v15  ;;  %891 = vmatprep.subr.mxu1 %v431_v16  ;;  %v490_v61 = vld [vmem:[%s1501_s3 + $0x358] sm:$0xff]  ;;  %v505_v63 = vld [vmem:[%s1501_s3 + $0x3d0] sm:$0xff]  ;;  %v472_v2 = vld [vmem:[%s1501_s3 + $0x2c8] sm:$0xff] }
  0x2c   :  { %857 = vmatpush3.msra.mxu0 %v383_v17  ;;  %892 = vmatpush3.msra.mxu1 %v415_v18  ;;  %v457_v0 = vld [vmem:[%s1501_s3 + $0x250] sm:$0xff]  ;;  %v504_v3 = vld [vmem:[%s1501_s3 + $0x3c8] sm:$0xff]  ;;  %v471_v6 = vld [vmem:[%s1501_s3 + $0x2c0] sm:$0xff]  ;;  %v69_v26 = vrot.slane %v1286_v25, %v68_v13 }
  0x2d   :  { %896 = vmatprep.subr.mxu0 %v478_v19  ;;  %931 = vmatprep.subr.mxu1 %v510_v20  ;;  %v489_v1 = vld [vmem:[%s1501_s3 + $0x350] sm:$0xff]  ;;  %v456_v4 = vld [vmem:[%s1501_s3 + $0x248] sm:$0xff]  ;;  %v503_v7 = vld [vmem:[%s1501_s3 + $0x3c0] sm:$0xff] }
  0x2e   :  { %v488_v5 = vld [vmem:[%s1501_s3 + $0x348] sm:$0xff]  ;;  %v455_v8 = vld [vmem:[%s1501_s3 + $0x240] sm:$0xff]  ;;  %v470_v11 = vld [vmem:[%s1501_s3 + $0x2b8] sm:$0xff] }
  0x2f   :  { %v487_v10 = vld [vmem:[%s1501_s3 + $0x340] sm:$0xff]  ;;  %v502_v12 = vld [vmem:[%s1501_s3 + $0x3b8] sm:$0xff]  ;;  %v469_v17 = vld [vmem:[%s1501_s3 + $0x2b0] sm:$0xff] }
  0x30   :  { %v454_v14 = vld [vmem:[%s1501_s3 + $0x238] sm:$0xff]  ;;  %v501_v18 = vld [vmem:[%s1501_s3 + $0x3b0] sm:$0xff]  ;;  %v468_v23 = vld [vmem:[%s1501_s3 + $0x2a8] sm:$0xff] }
  0x31   :  { %v486_v15 = vld [vmem:[%s1501_s3 + $0x338] sm:$0xff]  ;;  %v453_v19 = vld [vmem:[%s1501_s3 + $0x230] sm:$0xff]  ;;  %v500_v24 = vld [vmem:[%s1501_s3 + $0x3a8] sm:$0xff] }
  0x32   :  { %v485_v20 = vld [vmem:[%s1501_s3 + $0x330] sm:$0xff]  ;;  %v825_v9 = vld [vmem:[%s1502_s4] ss:$0 sm:$0xff] }
  0xc6   :  { %v156_v32 = vpop.f32.mrf.mxu0  ;;  %v227_v33 = vpop.f32.mrf.mxu1 }
  0xc7   :  { %v228_v34 = vadd.f32 %v227_v33, %v57_v28  ;;  %v157_v35 = vadd.f32 %v156_v32, %v49_v29  ;;  %v452_v29 = vld [vmem:[%s1501_s3 + $0x228] sm:$0xff]  ;;  %v64_v32 = vsub.s32 4, %v1279_v22  ;;  %v467_v33 = vld [vmem:[%s1501_s3 + $0x2a0] sm:$0xff]  ;;  %v77_v22 = vrot.slane %v1286_v25, %v76_v21 }
  0xc8   :  { %v158_v36 = vpop.f32.mrf.mxu0  ;;  %v229_v37 = vpop.f32.mrf.mxu1 }
  0xc9   :  { %v159_v38 = vadd.f32 %v158_v36, %v53_v30  ;;  %v230_v39 = vadd.f32 %v229_v37, %v61_v31  ;;  %v376_v40 = vmax.f32 %v228_v34, 0.0  ;;  %v374_v43 = vmax.f32 %v157_v35, 0.0  ;;  %v484_v30 = vld [vmem:[%s1501_s3 + $0x328] sm:$0xff]  ;;  %v499_v34 = vld [vmem:[%s1501_s3 + $0x3a0] sm:$0xff] }
  0xca   :  { %v451_v35 = vld [vmem:[%s1501_s3 + $0x220] sm:$0xff] }
  0xcb   :  { %v375_v41 = vmax.f32 %v159_v38, 0.0  ;;  %v377_v42 = vmax.f32 %v230_v39, 0.0  ;;  %v298_v16 = vpop.f32.mrf.mxu0  ;;  %v483_v36 = vld [vmem:[%s1501_s3 + $0x320] sm:$0xff]  ;;  %v73_v38 = vrot.slane %v1286_v25, %v72_v27  ;;  %v466_v39 = vld [vmem:[%s1501_s3 + $0x298] sm:$0xff] }
  0xcd   :  { %575 = vmatprep.mubr.f32.mxu0 %v375_v41  ;;  %645 = vmatprep.mubr.f32.mxu1 %v377_v42  ;;  %v369_v28 = vpop.f32.mrf.mxu1  ;;  %v300_v31 = vpop.f32.mrf.mxu0  ;;  %v450_v42 = vld [vmem:[%s1501_s3 + $0x218] sm:$0xff] }
  0xce   :  { %576 = vmatmul.mubr.f32.vlgmr.msra.gmra.mxu0 %v374_v43  ;;  %646 = vmatmul.mubr.f32.vlgmr.msra.gmra.mxu1 %v376_v40  ;;  %v301_v37 = vadd.f32 %v300_v31, %v69_v26  ;;  %v498_v40 = vld [vmem:[%s1501_s3 + $0x398] sm:$0xff] }
  0xcf   :  { %897 = vmatpush3.msra.mxu0 %v462_v44  ;;  %932 = vmatpush3.msra.mxu1 %v494_v45  ;;  %v371_v41 = vpop.f32.mrf.mxu1  ;;  %v482_v43 = vld [vmem:[%s1501_s3 + $0x318] sm:$0xff]  ;;  %v65_v44 = vrot.slane %v1286_v25, %v64_v32  ;;  %v465_v45 = vld [vmem:[%s1501_s3 + $0x290] sm:$0xff] }
  0xd0   :  { %898 = vmatprep.subr.mxu0 %v477_v46  ;;  %933 = vmatprep.subr.mxu1 %v509_v47  ;;  %v497_v46 = vld [vmem:[%s1501_s3 + $0x390] sm:$0xff]  ;;  %v372_v47 = vadd.f32 %v371_v41, %v77_v22 }
  0xd1   :  { %899 = vmatpush3.msra.mxu0 %v461_v48  ;;  %934 = vmatpush3.msra.mxu1 %v493_v49  ;;  %v449_v48 = vld [vmem:[%s1501_s3 + $0x210] sm:$0xff]  ;;  %v379_v49 = vmax.f32 %v301_v37, 0.0 }
  0xd2   :  { %900 = vmatprep.subr.mxu0 %v476_v50  ;;  %935 = vmatprep.subr.mxu1 %v508_v51  ;;  %v481_v25 = vld [vmem:[%s1501_s3 + $0x310] sm:$0xff]  ;;  %v370_v50 = vadd.f32 %v369_v28, %v73_v38  ;;  %v464_v51 = vld [vmem:[%s1501_s3 + $0x288] sm:$0xff] }
  0xd3   :  { %901 = vmatpush3.msra.mxu0 %v460_v52  ;;  %936 = vmatpush3.msra.mxu1 %v492_v53  ;;  %v496_v52 = vld [vmem:[%s1501_s3 + $0x388] sm:$0xff] }
  0xd4   :  { %902 = vmatprep.subr.mxu0 %v475_v54  ;;  %937 = vmatprep.subr.mxu1 %v507_v55  ;;  %v448_v53 = vld [vmem:[%s1501_s3 + $0x208] sm:$0xff]  ;;  %v299_v54 = vadd.f32 %v298_v16, %v65_v44 }
  0xd5   :  { %903 = vmatpush3.msra.mxu0 %v459_v56  ;;  %938 = vmatpush3.msra.mxu1 %v491_v57  ;;  %v480_v55 = vld [vmem:[%s1501_s3 + $0x308] sm:$0xff]  ;;  %v463_v56 = vld [vmem:[%s1501_s3 + $0x280] sm:$0xff]  ;;  %v381_v57 = vmax.f32 %v372_v47, 0.0 }
  0xd6   :  { %904 = vmatprep.subr.mxu0 %v474_v58  ;;  %939 = vmatprep.subr.mxu1 %v506_v59  ;;  %v495_v58 = vld [vmem:[%s1501_s3 + $0x380] sm:$0xff] }
  0xd7   :  { %905 = vmatpush3.msra.mxu0 %v458_v60  ;;  %940 = vmatpush3.msra.mxu1 %v490_v61  ;;  %v447_v59 = vld [vmem:[%s1501_s3 + $0x200] sm:$0xff]  ;;  %v380_v60 = vmax.f32 %v370_v50, 0.0 }
  0xd8   :  { %906 = vmatprep.subr.mxu0 %v473_v62  ;;  %941 = vmatprep.subr.mxu1 %v505_v63  ;;  %v479_v61 = vld [vmem:[%s1501_s3 + $0x300] sm:$0xff]  ;;  %v378_v62 = vmax.f32 %v299_v54, 0.0 }
  0xd9   :  { %907 = vmatpush3.msra.mxu0 %v457_v0  ;;  %942 = vmatpush3.msra.mxu1 %v489_v1 }
  0xda   :  { %908 = vmatprep.subr.mxu0 %v472_v2  ;;  %943 = vmatprep.subr.mxu1 %v504_v3 }
  0xdb   :  { %909 = vmatpush3.msra.mxu0 %v456_v4  ;;  %944 = vmatpush3.msra.mxu1 %v488_v5 }
  0xdc   :  { %910 = vmatprep.subr.mxu0 %v471_v6  ;;  %945 = vmatprep.subr.mxu1 %v503_v7 }
  0xdd   :  { %911 = vmatpush3.msra.mxu0 %v455_v8  ;;  %946 = vmatpush3.msra.mxu1 %v487_v10 }
  0xde   :  { %912 = vmatprep.subr.mxu0 %v470_v11  ;;  %947 = vmatprep.subr.mxu1 %v502_v12 }
  0xdf   :  { %913 = vmatpush3.msra.mxu0 %v454_v14  ;;  %948 = vmatpush3.msra.mxu1 %v486_v15  ;;  %v382_v14 = vld [vmem:[#allocation2] sm:$0xff] }
  0xe0   :  { %914 = vmatprep.subr.mxu0 %v469_v17  ;;  %949 = vmatprep.subr.mxu1 %v501_v18 }
  0xe1   :  { %915 = vmatpush3.msra.mxu0 %v453_v19  ;;  %950 = vmatpush3.msra.mxu1 %v485_v20 }
  0xe2   :  { %916 = vmatprep.subr.mxu0 %v468_v23  ;;  %951 = vmatprep.subr.mxu1 %v500_v24 }
  0xe3   :  { %917 = vmatpush3.msra.mxu0 %v452_v29  ;;  %952 = vmatpush3.msra.mxu1 %v484_v30 }
  0xe4   :  { %918 = vmatprep.subr.mxu0 %v467_v33  ;;  %953 = vmatprep.subr.mxu1 %v499_v34 }
  0xe5   :  { %919 = vmatpush3.msra.mxu0 %v451_v35  ;;  %954 = vmatpush3.msra.mxu1 %v483_v36 }
  0xe6   :  { %920 = vmatprep.subr.mxu0 %v466_v39  ;;  %955 = vmatprep.subr.mxu1 %v498_v40 }
  0xe7   :  { %921 = vmatpush3.msra.mxu0 %v450_v42  ;;  %956 = vmatpush3.msra.mxu1 %v482_v43 }
  0xe8   :  { %922 = vmatprep.subr.mxu0 %v465_v45  ;;  %957 = vmatprep.subr.mxu1 %v497_v46 }
  0xe9   :  { %923 = vmatpush3.msra.mxu0 %v449_v48  ;;  %958 = vmatpush3.msra.mxu1 %v481_v25 }
  0xea   :  { %924 = vmatprep.subr.mxu0 %v464_v51  ;;  %959 = vmatprep.subr.mxu1 %v496_v52 }
  0xeb   :  { %925 = vmatpush3.msra.mxu0 %v448_v53  ;;  %715 = vmatprep.mubr.f32.mxu0 %v379_v49 }
  0xec   :  { %960 = vmatpush3.msra.mxu1 %v480_v55  ;;  %926 = vmatprep.subr.mxu0 %v463_v56 }
  0xed   :  { %961 = vmatprep.subr.mxu1 %v495_v58  ;;  %927 = vmatpush3.msra.mxu0 %v447_v59 }
  0xee   :  { %962 = vmatpush3.msra.mxu1 %v479_v61  ;;  %785 = vmatprep.mubr.f32.mxu1 %v381_v57 }
  0xef   :  { %716 = vmatmul.mubr.f32.vlgmr.msra.gmra.mxu0 %v378_v62  ;;  %786 = vmatmul.mubr.f32.vlgmr.msra.gmra.mxu1 %v380_v60 }
 0x18e   :  { %v858_v63 = vpop.f32.mrf.mxu0  ;;  %v893_v0 = vpop.f32.mrf.mxu1 }
 0x190   :  { %v859_v1 = vpop.f32.mrf.mxu0  ;;  %v894_v2 = vpop.f32.mrf.mxu1 }
 0x191   :  { %v860_v3 = vadd.f32 %v859_v1, %v858_v63  ;;  %v895_v4 = vadd.f32 %v894_v2, %v893_v0 }
 0x193   :  { %v648_v10 = vadd.f32 %v895_v4, %v860_v3 }
 0x1af   :  { %v928_v5 = vpop.f32.mrf.mxu0  ;;  %v963_v6 = vpop.f32.mrf.mxu1 }
 0x1b1   :  { %v929_v7 = vpop.f32.mrf.mxu0  ;;  %v964_v8 = vpop.f32.mrf.mxu1 }
 0x1b2   :  { %v930_v11 = vadd.f32 %v929_v7, %v928_v5  ;;  %v965_v13 = vadd.f32 %v964_v8, %v963_v6 }
 0x1b4   :  { %v718_v12 = vadd.f32 %v930_v11, %v648_v10 }
 0x1b6   :  { %v788_v15 = vadd.f32 %v965_v13, %v718_v12 }
 0x1b8   :  { %v791_v16 = vadd.f32 %v788_v15, %v382_v14 }
 0x1ba   :  { %793 = vst.msk [vmem:[#allocation2] sm:$0xff] %vm25_vm1, %v791_v16 }
 0x1c1   :  { %v797_v17 = vld [vmem:[#allocation2] sm:$0xff] }
 0x1c2   :  { %v805_v18 = vadd.f32 %v825_v9, %v797_v17 }
 0x1c4   :  { %806 = vst.msk [vmem:[#allocation3] sm:$0xff] %vm25_vm1, %v805_v18 }
 0x1c5   :  { %979 = shalt.err (!%p976_p4)
}
 0x1c6   :  { %816 = dma.vmem_to_hbm [thread:$0]  %s814_s12, 128, %s1503_s5, [#allocation4]  }
 0x1c7   :  { %988 = dma.done.wait [#allocation4], 128  }
 0x1c8   :  { %989 = vsyncadd [#allocation4], 4294967168 }
 0x1c9   :  { %820 = vsyncpa [#allocation4], 1 }

</bundles_post_ra>
